<compile_context>
chip_gen: v7x
topology: tpu7x:2x2x1
jax: 0.10.0
libtpu: 0.0.40
codegen_flags: <defaults>
</compile_context>

<pallas_src>
import jax
import jax.numpy as jnp
from jax.experimental import pallas as pl
from jax.experimental.pallas import tpu as pltpu

EPS = 1e-5  # PyTorch BatchNorm default eps


def _round_up(x, m):
    return ((x + m - 1) // m) * m


def pcb_head_kernel(vg_ref, w5_ref, vecs_ref, wc_ref, feat_ref, logits_ref):
    # vg_ref:   (TB, C)      bf16 pooled features of part p for a batch block n
    # w5_ref:   (C, R)       bf16 conv5 1x1 weight with BN2d scale folded in (resident)
    # vecs_ref: (3, R)       f32  [bias2; scale1; shift1] (resident)
    # wc_ref:   (1, R, Kp)   bf16 classifier weight of part p
    z = jnp.dot(vg_ref[...], w5_ref[...],
                preferred_element_type=jnp.float32)            # (TB, R) f32
    bias2 = vecs_ref[0:1, :]      # (1, R)
    scale1 = vecs_ref[1:2, :]     # (1, R)
    shift1 = vecs_ref[2:3, :]     # (1, R)

    # conv5: 1x1 conv + BN2d (folded) + ReLU
    v_h = jnp.maximum(z + bias2, 0.0)
    # bnneck BatchNorm1d (eval) folded to a per-channel affine
    feat = v_h * scale1 + shift1                               # (TB, R) f32
    feat_ref[...] = feat.astype(feat_ref.dtype)

    # Part-p classifier (Linear R -> Kp, bias=False), one full-width matmul.
    y = jnp.dot(feat.astype(wc_ref.dtype), wc_ref[0],
                preferred_element_type=jnp.float32)            # (TB, Kp)
    logits_ref[...] = y.astype(logits_ref.dtype)


def pcb_head_forward(f, params, parts=6):
    """f: (N, C, H, W) featuremaps output (NCHW).  Returns (feat_cat, logits)."""
    N, C, H, W = f.shape
    assert H % parts == 0, "adaptive pool implemented for H divisible by parts"
    strip = H // parts
    R = params["w5"].shape[1]
    K = params["wc"].shape[2]

    # ---- host-side (XLA) prep ----------------------------------------------
    # parts_avgpool on NCHW, then lay the tiny pooled tensor out as
    # (N, parts*C) so each kernel block is a plain 2-D, sublane/lane-aligned tile.
    # TODO(synk): pooling could also be fused into the kernel; kept in XLA since
    # the pooled tensor is tiny compared to the backbone output.
    v_g = f.reshape(N, C, parts, strip, W).mean(axis=(3, 4))      # (N, C, parts)
    v_g = v_g.transpose(0, 2, 1).reshape(N, parts * C)            # (N, parts*C)
    # dropout(p=0.5): eval mode -> identity.

    # Fold BN2d (eval) into the conv5 weight + bias; fold BN1d into (scale, shift).
    scale2 = params["bn2_gamma"] * jax.lax.rsqrt(params["bn2_var"] + EPS)
    w5 = (params["w5"] * scale2[None, :]).astype(jnp.bfloat16)    # (C, R) bf16
    bias2 = params["bn2_beta"] - params["bn2_mean"] * scale2
    scale1 = params["bn1_gamma"] * jax.lax.rsqrt(params["bn1_var"] + EPS)
    shift1 = params["bn1_beta"] - params["bn1_mean"] * scale1
    vecs = jnp.stack([bias2, scale1, shift1], axis=0).astype(jnp.float32)  # (3, R)

    # Pad classifier output dim to a lane multiple (unmasked stores in-kernel).
    Kp = _round_up(K, 128)
    wc = params["wc"]
    if Kp != K:
        wc = jnp.pad(wc, ((0, 0), (0, 0), (0, Kp - K)))           # (parts, R, Kp)
    wc = wc.astype(jnp.bfloat16)

    # Batch tile: multiple of 8 sublanes; 256 rows = one full MXU M-pass (v6e/v7x),
    # two full 128-row passes on v5e.  parts is a second parallel grid axis, so
    # v7x's two TensorCores always have work even when the batch fits one tile.
    Np8 = _round_up(max(N, 1), 8)
    TB = Np8 if Np8 <= 256 else 256
    Np = _round_up(N, TB)
    if Np != N:
        v_g = jnp.pad(v_g, ((0, Np - N), (0, 0)))
    v_g = v_g.astype(jnp.bfloat16)

    grid = (parts, Np // TB)   # parts outermost: wc block re-DMA'd only `parts` times

    feat, logits = pl.pallas_call(
        pcb_head_kernel,
        out_shape=(jax.ShapeDtypeStruct((Np, parts * R), jnp.float32),
                   jax.ShapeDtypeStruct((Np, parts * Kp), jnp.float32)),
        grid=grid,
        in_specs=[
            pl.BlockSpec((TB, C), lambda p, n: (n, p)),           # pooled part features
            pl.BlockSpec((C, R), lambda p, n: (0, 0)),            # folded conv5 weight (resident)
            pl.BlockSpec((3, R), lambda p, n: (0, 0)),            # bias2 / scale1 / shift1
            pl.BlockSpec((1, R, Kp), lambda p, n: (p, 0, 0)),     # part-p classifier weight
        ],
        out_specs=(pl.BlockSpec((TB, R), lambda p, n: (n, p)),    # writes final layout directly
                   pl.BlockSpec((TB, Kp), lambda p, n: (n, p))),
        compiler_params=pltpu.CompilerParams(
            dimension_semantics=("parallel", "parallel")),
    )(v_g, w5, vecs, wc)

    # eval, neck_feat='after': cat(v[0..parts-1], dim=1) == (N, parts*R)
    feat_cat = feat[:N]
    # NOTE: PyTorch eval forward also computes the classifier logits (y_i) but
    # discards them; we return them alongside for completeness.
    logits = logits.reshape(Np, parts, Kp)[:N, :, :K]
    return feat_cat, logits


def ref_forward(f, params, parts=6):
    """Pure-JAX (f32) reference of the same eval-mode PCB head."""
    N, C, H, W = f.shape
    strip = H // parts
    R = params["w5"].shape[1]
    v_g = f.reshape(N, C, parts, strip, W).mean(axis=(3, 4))          # (N, C, parts)
    z = jnp.einsum("ncp,cr->npr", v_g, params["w5"])
    z = (z - params["bn2_mean"]) * (params["bn2_gamma"] * jax.lax.rsqrt(params["bn2_var"] + EPS)) \
        + params["bn2_beta"]
    v_h = jnp.maximum(z, 0.0)
    feat = (v_h - params["bn1_mean"]) * (params["bn1_gamma"] * jax.lax.rsqrt(params["bn1_var"] + EPS)) \
        + params["bn1_beta"]
    logits = jnp.einsum("npr,prk->npk", feat, params["wc"])
    return feat.reshape(N, parts * R), logits


def init_params(key, C, R, K, parts):
    """Deterministic init matching PCB._init_params (fresh, no checkpoint)."""
    k1, k2 = jax.random.split(key)
    # conv5 1x1 conv: kaiming_normal, mode='fan_out' (fan_out = R*1*1)
    std = (2.0 / R) ** 0.5
    w5 = (jax.random.normal(k1, (R, C), jnp.float32) * std).T            # kernel layout (C, R)
    # classifiers: normal(0, 0.01), weight (K, R) -> kernel layout (parts, R, K)
    wc = jnp.transpose(jax.random.normal(k2, (parts, K, R), jnp.float32) * 0.01, (0, 2, 1))
    ones = jnp.ones((R,), jnp.float32)
    zeros = jnp.zeros((R,), jnp.float32)
    return dict(
        w5=w5, wc=wc,
        bn2_gamma=ones, bn2_beta=zeros, bn2_mean=zeros, bn2_var=ones,    # BatchNorm2d fresh stats
        bn1_gamma=ones, bn1_beta=zeros, bn1_mean=zeros, bn1_var=ones,    # BatchNorm1d (bnneck)
    )


if __name__ == "__main__":
    key = jax.random.PRNGKey(0)
    kf, kp = jax.random.split(key)

    # Small synthetic shapes: f = featuremaps(x) output.
    # 512 stands in for 512*block.expansion (expansion=1); H divisible by parts.
    N, C, H, W = 2, 512, 12, 4
    parts, R, K = 6, 256, 128        # parts=6 (pcb_p6), reduced_dim=256, num_classes=128

    f = jax.random.normal(kf, (N, C, H, W), jnp.float32)
    params = init_params(kp, C, R, K, parts)

    feat_cat, logits = pcb_head_forward(f, params, parts=parts)
    jax.block_until_ready((feat_cat, logits))

    ref_feat, ref_logits = ref_forward(f, params, parts=parts)
    assert feat_cat.shape == (N, parts * R)
    assert logits.shape == (N, parts, K)
    # bf16 MXU operands (f32 accumulation / elementwise) -> loosened tolerance.
    assert jnp.allclose(feat_cat, ref_feat, rtol=2e-2, atol=2e-2)
    assert jnp.allclose(logits, ref_logits, rtol=2e-2, atol=2e-2)

    print("KERNEL_OK")
</pallas_src>

<mosaic_0001>
module attributes {stable_mosaic.version = 11 : i64} {
  func.func @pcb_head_kernel(%arg0: i32, %arg1: i32, %arg2: memref<8x512xbf16, #tpu.memory_space<vmem>>, %arg3: memref<512x256xbf16, #tpu.memory_space<vmem>>, %arg4: memref<3x256xf32, #tpu.memory_space<vmem>>, %arg5: memref<1x256x128xbf16, #tpu.memory_space<vmem>>, %arg6: memref<8x256xf32, #tpu.memory_space<vmem>>, %arg7: memref<8x128xf32, #tpu.memory_space<vmem>>) attributes {dimension_semantics = [#tpu.dimension_semantics<parallel>, #tpu.dimension_semantics<parallel>], iteration_bounds = array<i64: 6, 1>, scalar_prefetch = 0 : i64, scratch_operands = 0 : i64, tpu.core_type = #tpu.core_type<tc>, window_params = [{transform_indices = @transform_0, window_bounds = array<i64: 8, 512>}, {pipeline_mode = #tpu.pipeline_mode<synchronous>, transform_indices = @transform_1, window_bounds = array<i64: 512, 256>}, {pipeline_mode = #tpu.pipeline_mode<synchronous>, transform_indices = @transform_2, window_bounds = array<i64: 3, 256>}, {transform_indices = @transform_3, window_bounds = array<i64: 1, 256, 128>}, {transform_indices = @transform_4, window_bounds = array<i64: 8, 256>}, {transform_indices = @transform_5, window_bounds = array<i64: 8, 128>}]} {
    %c0 = arith.constant 0 : index
    %c0_0 = arith.constant 0 : index
    %0 = vector.load %arg2[%c0, %c0_0] : memref<8x512xbf16, #tpu.memory_space<vmem>>, vector<8x512xbf16>
    %c0_1 = arith.constant 0 : index
    %c0_2 = arith.constant 0 : index
    %1 = vector.load %arg3[%c0_1, %c0_2] : memref<512x256xbf16, #tpu.memory_space<vmem>>, vector<512x256xbf16>
    %cst = arith.constant dense<0.000000e+00> : vector<8x256xf32>
    %2 = tpu.matmul %0, %1, %cst {dimension_numbers = #tpu.dot_dimension_numbers<[1], [0], [0], [1], [0, 0, 1, 1], [], []>} : vector<8x512xbf16>, vector<512x256xbf16>, vector<8x256xf32> -> vector<8x256xf32>
    %c0_3 = arith.constant 0 : index
    %c0_4 = arith.constant 0 : index
    %3 = vector.load %arg4[%c0_3, %c0_4] : memref<3x256xf32, #tpu.memory_space<vmem>>, vector<1x256xf32>
    %c1 = arith.constant 1 : index
    %c0_5 = arith.constant 0 : index
    %4 = vector.load %arg4[%c1, %c0_5] : memref<3x256xf32, #tpu.memory_space<vmem>>, vector<1x256xf32>
    %c2 = arith.constant 2 : index
    %c0_6 = arith.constant 0 : index
    %5 = vector.load %arg4[%c2, %c0_6] : memref<3x256xf32, #tpu.memory_space<vmem>>, vector<1x256xf32>
    %6 = vector.broadcast %3 : vector<1x256xf32> to vector<8x256xf32>
    %7 = arith.addf %2, %6 : vector<8x256xf32>
    %cst_7 = arith.constant 0.000000e+00 : f32
    %8 = vector.broadcast %cst_7 : f32 to vector<8x256xf32>
    %9 = arith.maximumf %7, %8 : vector<8x256xf32>
    %10 = vector.broadcast %4 : vector<1x256xf32> to vector<8x256xf32>
    %11 = arith.mulf %9, %10 : vector<8x256xf32>
    %12 = vector.broadcast %5 : vector<1x256xf32> to vector<8x256xf32>
    %13 = arith.addf %11, %12 : vector<8x256xf32>
    %c0_8 = arith.constant 0 : index
    %c0_9 = arith.constant 0 : index
    %14 = vector.load %arg6[%c0_8, %c0_9] : memref<8x256xf32, #tpu.memory_space<vmem>>, vector<8x256xf32>
    tpu.vector_store %arg6[%c0_8, %c0_9], %13 {strides = array<i32>} : memref<8x256xf32, #tpu.memory_space<vmem>>, vector<8x256xf32>,
    %15 = arith.truncf %13 : vector<8x256xf32> to vector<8x256xbf16>
    %c0_10 = arith.constant 0 : index
    %c0_11 = arith.constant 0 : index
    %c0_12 = arith.constant 0 : index
    %16 = vector.load %arg5[%c0_10, %c0_11, %c0_12] : memref<1x256x128xbf16, #tpu.memory_space<vmem>>, vector<1x256x128xbf16>
    %17 = vector.shape_cast %16 : vector<1x256x128xbf16> to vector<256x128xbf16>
    %cst_13 = arith.constant dense<0.000000e+00> : vector<8x128xf32>
    %18 = tpu.matmul %15, %17, %cst_13 {dimension_numbers = #tpu.dot_dimension_numbers<[1], [0], [0], [1], [0, 0, 1, 1], [], []>} : vector<8x256xbf16>, vector<256x128xbf16>, vector<8x128xf32> -> vector<8x128xf32>
    %c0_14 = arith.constant 0 : index
    %c0_15 = arith.constant 0 : index
    %19 = vector.load %arg7[%c0_14, %c0_15] : memref<8x128xf32, #tpu.memory_space<vmem>>, vector<8x128xf32>
    tpu.vector_store %arg7[%c0_14, %c0_15], %18 {strides = array<i32>} : memref<8x128xf32, #tpu.memory_space<vmem>>, vector<8x128xf32>,
    return
  }
  func.func @transform_0(%arg0: i32, %arg1: i32) -> (i32, i32) {
    %c0_i32 = arith.constant 0 : i32
    return %arg1, %arg0 : i32, i32
  }
  func.func @transform_1(%arg0: i32, %arg1: i32) -> (i32, i32) {
    %c0_i32 = arith.constant 0 : i32
    %c0_i32_0 = arith.constant 0 : i32
    %c0_i32_1 = arith.constant 0 : i32
    return %c0_i32, %c0_i32_0 : i32, i32
  }
  func.func @transform_2(%arg0: i32, %arg1: i32) -> (i32, i32) {
    %c0_i32 = arith.constant 0 : i32
    %c0_i32_0 = arith.constant 0 : i32
    %c0_i32_1 = arith.constant 0 : i32
    return %c0_i32, %c0_i32_0 : i32, i32
  }
  func.func @transform_3(%arg0: i32, %arg1: i32) -> (i32, i32, i32) {
    %c0_i32 = arith.constant 0 : i32
    %c0_i32_0 = arith.constant 0 : i32
    %c0_i32_1 = arith.constant 0 : i32
    return %arg0, %c0_i32, %c0_i32_0 : i32, i32, i32
  }
  func.func @transform_4(%arg0: i32, %arg1: i32) -> (i32, i32) {
    %c0_i32 = arith.constant 0 : i32
    return %arg1, %arg0 : i32, i32
  }
  func.func @transform_5(%arg0: i32, %arg1: i32) -> (i32, i32) {
    %c0_i32 = arith.constant 0 : i32
    return %arg1, %arg0 : i32, i32
  }
}

</mosaic_0001>

<bundles_post_ra>
// kernel: tpu_custom_call.1
= control target key start
LH: loop header
LB: loop body
LE: loop exit
PB: predicated region body
PF: predicated region fallthrough
CT: control target
= control target key end

     0   :  { %s2209_s0 = inlined_call_operand.hbm [shape: bf16[8,3072], index: 0, kind: input, shape index: {}]   ;;  %s2210_s1 = inlined_call_operand.hbm [shape: bf16[512,256], index: 1, kind: input, shape index: {}]   ;;  %s2211_s2 = inlined_call_operand.hbm [shape: f32[3,256], index: 2, kind: input, shape index: {}]   ;;  %s2212_s3 = inlined_call_operand.hbm [shape: bf16[6,256,128], index: 3, kind: input, shape index: {}]   ;;  %s2213_s4 = inlined_call_operand.hbm [shape: f32[8,1536], index: 4, kind: output, shape index: {0}]   ;;  %s2214_s5 = inlined_call_operand.hbm [shape: f32[8,768], index: 5, kind: output, shape index: {1}]  }
   0x1   :  { %2219 = sst [smem:[#allocation18_spill]] %s2209_s0 }
   0x2   :  { %2220 = sst [smem:[#allocation19_spill]] %s2210_s1 }
   0x3   :  { %11 = vsyncpa [#allocation3], 0 }
   0x4   :  { %13 = vsyncpa [#allocation3 + $0x1], 0 }
   0x5   :  { %14 = vsyncpa [#allocation6], 0 }
   0x6   :  { %15 = vsyncpa [#allocation9], 0 }
   0x7   :  { %17 = vsyncpa [#allocation9 + $0x1], 0 }
   0x8   :  { %18 = vsyncpa [#allocation4], 0 }
   0x9   :  { %20 = vsyncpa [#allocation4 + $0x1], 0 }
   0xa   :  { %21 = vsyncpa [#allocation12], 0 }
   0xb   :  { %23 = vsyncpa [#allocation12 + $0x1], 0  ;;  %s1870_s18 = smov 0   ;;  %s1872_s19 = smov 0  }
   0xc   :  { %s1874_s20 = smov 0   ;;  %s1876_s21 = smov 0  }
   0xd   :  { %s1878_s22 = smov 0   ;;  %s1880_s23 = smov 0  }
   0xe LB: > { %s1238_s24 = sadd.s32 4294967295, %s1828_s23   ;;  %s1239_s25 = sadd.s32 4294967294, %s1828_s23   ;;  %s1828_s23 = sphi %s1880_s23, %s29_s23   ;;  %s1824_s22 = sphi %s1878_s22, %s2241_s22   ;;  %s1820_s21 = sphi %s1876_s21, %s2240_s21   ;;  %s1816_s20 = sphi %s1874_s20, %s2239_s20   ;;  %s1812_s19 = sphi %s1872_s19, %s2238_s19   ;;  %s1808_s18 = sphi %s1870_s18, %s2237_s18  }
   0xf   : > { %p63_p0 = scmp.ne.s32.totalorder %s1812_s19, %s1808_s18  ;;  %p1904_p1 = scmp.eq.s32.totalorder %s1238_s24, 0 }
  0x10   : > { %p1908_p2 = scmp.eq.s32.totalorder %s1238_s24, 5  ;;  %p163_p3 = scmp.eq.s32.totalorder %s1239_s25, 5 }
  0x11   : > { %s2221_s26 = scalar_select %p1904_p1, 1, 0 }
  0x12   : > { %s2222_s27 = scalar_select %p1908_p2, 1, 0 }
  0x13   : > { %p1914_p4 = por %p1904_p1, %p63_p0  ;;  %p1240_p5 = scmp.ge.s32.totalorder %s1828_s23, 1 }
  0x14   : > { %p1919_p6 = por %p163_p3, %p63_p0  ;;  %p198_p7 = scmp.lt.s32.totalorder %s1828_s23, 7 }
  0x15   : > { %s2223_s28 = scalar_select %p1914_p4, 1, 0 }
  0x16   : > { %s2224_s29 = scalar_select %p1919_p6, 1, 0 }
  0x17   : > { %p1924_p8 = pnand %p1240_p5, %p198_p7  ;;  %s1830_s6 = smov [#allocation5]  }
  0x18   : > { %s210_s7 = sshll.u32 %s1830_s6, 4  ;;  %s1831_s9 = smov [#allocation7]   ;;  %s211_s7 = int_to_ptr.vmem [resolvable:$true] %s210_s7 }
  0x19   : > { %s2225_s30 = scalar_select %p1924_p8, 1, 0 }
  0x1a   : > { %p1393_p9 = pneg %p1924_p8  ;;  %s224_s10 = sshll.u32 %s1831_s9, 4  ;;  %s1936_s10 = int_to_ptr.vmem [resolvable:$true] %s224_s10 }
  0x1b   : > { %s2227_s1 = sld [smem:[#allocation19_spill]] }
  0x1c   : > { %p1932_p10 = pnand %p1393_p9, %p1904_p1 }
  0x1e   : > { %p1592_p12 = pneg %p1932_p10 }
  0x21   : > { %s1590_s13 = scalar_lea.hbm %s2227_s1, 8192 }
  0x22   : > { %p1591_p11 = scmp.ne.s32.totalorder %s2227_s1, %s1590_s13  ;;  %p1597_p3 = scmp.lt.u32.totalorder %s1590_s13, %s2227_s1 }
  0x24   : > { %p1593_p13 = pnand %p1592_p12, %p1591_p11 }
  0x26   : > { %p1594_p0 = pneg %p1593_p13 }
  0x28   : > { %p1599_p5 = pnand %p1597_p3, %p1594_p0 }
  0x2a   : > { %1602 = shalt.err (!%p1599_p5)
}
  0x2b   : > { %s1603_s24 = scalar_lea.vmem %s211_s7, 8192  ;;  %p1611_p1 = scmp.lt.s32.totalorder %s211_s7, %s211_s7 }
  0x2c   : > { %p1604_p7 = scmp.ne.s32.totalorder %s211_s7, %s1603_s24  ;;  %p1612_p4 = scmp.lt.s32.totalorder %s1603_s24, %s1603_s24 }
  0x2e   : > { %p1606_p9 = pnand %p1604_p7, %p1592_p12  ;;  %p1613_p8 = por %p1612_p4, %p1611_p1 }
  0x30   : > { %p1607_p6 = pneg %p1606_p9 }
  0x32   : > { %p1614_p2 = pnand %p1613_p8, %p1607_p6 }
  0x34   : > { %1617 = shalt.err (!%p1614_p2)
}
  0x35   : > { %s1832_s25 = smov 128   ;;  %s1833_s6 = smov 8  }
  0x36   : > { %1396 = dma.hbm_to_vmem [thread:$0]  (!%p1932_p10), %s2227_s1, 8192, %s211_s7, [#allocation6], %s1832_s25, %s1832_s25, %s1833_s6  }
  0x37   : > { %s1618_s14 = scalar_lea.hbm %s2211_s2, 128 }
  0x38   : > { %p1619_p11 = scmp.ne.s32.totalorder %s2211_s2, %s1618_s14  ;;  %p1625_p4 = scmp.lt.u32.totalorder %s1618_s14, %s2211_s2 }
  0x3a   : > { %p1621_p1 = pnand %p1619_p11, %p1592_p12 }
  0x3c   : > { %p1622_p2 = pneg %p1621_p1 }
  0x3e   : > { %p1627_p6 = pnand %p1625_p4, %p1622_p2 }
  0x40   : > { %1630 = shalt.err (!%p1627_p6)
}
  0x41   : > { %s1631_s7 = scalar_lea.vmem %s1936_s10, 128  ;;  %p1639_p3 = scmp.lt.s32.totalorder %s1936_s10, %s1936_s10 }
  0x42   : > { %p1632_p8 = scmp.ne.s32.totalorder %s1936_s10, %s1631_s7  ;;  %p1640_p5 = scmp.lt.s32.totalorder %s1631_s7, %s1631_s7 }
  0x44   : > { %p1634_p13 = pnand %p1632_p8, %p1592_p12  ;;  %p1641_p7 = por %p1640_p5, %p1639_p3 }
  0x46   : > { %p1635_p0 = pneg %p1634_p13 }
  0x48   : > { %p1642_p9 = pnand %p1641_p7, %p1635_p0 }
  0x4a   : > { %1645 = shalt.err (!%p1642_p9)
}
  0x4b   : > { %1399 = dma.hbm_to_vmem [thread:$0]  (!%p1932_p10), %s2211_s2, 128, %s1936_s10, [#allocation6]  }
  0x4c   : > { %s41_s9 = sadd.s32 1, %s1824_s22  ;;  %s50_s11 = sadd.s32 1, %s1816_s20 }
  0x4d   : > { %p43_p12 = scmp.ge.s32.totalorder %s41_s9, 6  ;;  %p57_p11 = scmp.ne.s32.totalorder %s1816_s20, %s1812_s19 }
  0x4e   : > { %p58_p1 = scmp.eq.s32.totalorder %s1828_s23, 0  ;;  %p1416_p2 = scmp.lt.s32.totalorder %s1828_s23, 6 }
  0x4f   : > { %s2243_s9 = smov (%p43_p12, %s41_s9), 0  ;;  %p2228_p6 = scmp.ne.s32.totalorder %s2222_s27, 0 }
  0x50   : > { %p59_p4 = por %p58_p1, %p57_p11  ;;  %s46_s12 = ssub.s32 %s1824_s22, %s2243_s9 }
  0x51   : > { %p1995_p8 = por %p2228_p6, %p57_p11  ;;  %s2002_s13 = sand.u32 1, %s1816_s20  }
  0x52   : > { %p48_p10 = scmp.eq.s32.totalorder %s46_s12, 0  ;;  %s1244_s10 = sshll.u32 %s2002_s13, 4 }
  0x53   : > { %s1348_s14 = sshll.u32 %s1824_s22, 8  ;;  %s2230_s0 = sld [smem:[#allocation18_spill]] }
  0x54   : > { %s2007_s15 = scalar_select %p48_p10, %s1816_s20, %s50_s11  }
  0x55   : > { %s239_s27 = scalar_lea.vmem [#allocation2], %s1244_s10  ;;  %p2016_p13 = pnand %p1416_p2, %p59_p4 }
  0x56   : > { %s249_s7 = sshll.u32 %s239_s27, 4  ;;  %s236_s11 = scalar_lea.sflag [#allocation3], %s2002_s13  ;;  %s2020_s7 = int_to_ptr.vmem [resolvable:$true] %s249_s7 }
  0x57   : > { %p1648_p3 = pneg %p2016_p13 }
  0x59   : > { %s2012_s24 = scalar_lea.hbm %s2230_s0, %s1348_s14  ;;  %s1651_s16 = scalar_lea.hbm %s2230_s0, 1536 }
  0x5a   : > { %s1646_s12 = scalar_lea.hbm %s2012_s24, 256  ;;  %p1652_p9 = scmp.lt.u32.totalorder %s2012_s24, %s2230_s0 }
  0x5b   : > { %p1647_p0 = scmp.ne.s32.totalorder %s2012_s24, %s1646_s12  ;;  %p1653_p12 = scmp.lt.u32.totalorder %s1651_s16, %s1646_s12 }
  0x5c   : > { %p1655_p1 = scmp.lt.u32.totalorder %s1646_s12, %s2012_s24 }
  0x5d   : > { %p1649_p5 = pnand %p1648_p3, %p1647_p0  ;;  %p1654_p11 = por %p1653_p12, %p1652_p9 }
  0x5f   : > { %p1650_p7 = pneg %p1649_p5  ;;  %p1656_p2 = por %p1655_p1, %p1654_p11 }
  0x61   : > { %p1657_p4 = pnand %p1656_p2, %p1650_p7 }
  0x63   : > { %1660 = shalt.err (!%p1657_p4)
}
  0x64   : > { %s1661_s6 = scalar_lea.vmem %s2020_s7, 256  ;;  %s1834_s10 = smov [#allocation2]  }
  0x65   : > { %p1662_p6 = scmp.ne.s32.totalorder %s2020_s7, %s1661_s6  ;;  %s1666_s14 = sshll.u32 %s1834_s10, 4  ;;  %s1667_s14 = int_to_ptr.vmem [resolvable:$false] %s1666_s14 }
  0x66   : > { %s1668_s17 = scalar_lea.vmem %s1667_s14, 512  ;;  %p1669_p5 = scmp.lt.s32.totalorder %s2020_s7, %s1667_s14 }
  0x67   : > { %p1664_p10 = pnand %p1662_p6, %p1648_p3  ;;  %p1670_p9 = scmp.lt.s32.totalorder %s1668_s17, %s1661_s6 }
  0x69   : > { %p1665_p0 = pneg %p1664_p10  ;;  %p1671_p12 = por %p1670_p9, %p1669_p5 }
  0x6b   : > { %p1672_p11 = pnand %p1671_p12, %p1665_p0 }
  0x6d   : > { %1675 = shalt.err (!%p1672_p11)
}
  0x6e   : > { %1403 = dma.hbm_to_vmem [thread:$0]  (!%p2016_p13), %s2012_s24, 256, %s2020_s7, %s236_s11  }
  0x6f   : > { %s1349_s12 = sshll.u32 %s1824_s22, 11  ;;  %s2232_s14 = sshll.u32 %s2002_s13, 7 }
  0x70   : > { %s2053_s10 = scalar_lea.hbm %s2212_s3, %s1349_s12  ;;  %s260_s6 = scalar_lea.vmem [#allocation8], %s2232_s14 }
  0x71   : > { %s267_s17 = sshll.u32 %s260_s6, 4  ;;  %s257_s0 = scalar_lea.sflag [#allocation9], %s2002_s13  ;;  %s2057_s17 = int_to_ptr.vmem [resolvable:$true] %s267_s17 }
  0x72   : > { %s1676_s1 = scalar_lea.hbm %s2053_s10, 2048  ;;  %s1681_s11 = scalar_lea.hbm %s2212_s3, 12288 }
  0x73   : > { %p1677_p7 = scmp.ne.s32.totalorder %s2053_s10, %s1676_s1  ;;  %p1682_p4 = scmp.lt.u32.totalorder %s2053_s10, %s2212_s3 }
  0x74   : > { %p1683_p6 = scmp.lt.u32.totalorder %s1681_s11, %s1676_s1  ;;  %p1685_p0 = scmp.lt.u32.totalorder %s1676_s1, %s2053_s10 }
  0x75   : > { %p1679_p1 = pnand %p1677_p7, %p1648_p3 }
  0x76   : > { %p1684_p10 = por %p1683_p6, %p1682_p4 }
  0x77   : > { %p1680_p2 = pneg %p1679_p1 }
  0x78   : > { %p1686_p5 = por %p1685_p0, %p1684_p10 }
  0x7a   : > { %p1687_p9 = pnand %p1686_p5, %p1680_p2 }
  0x7c   : > { %1690 = shalt.err (!%p1687_p9)
}
  0x7d   : > { %s1691_s27 = scalar_lea.vmem %s2057_s17, 2048  ;;  %s1835_s14 = smov [#allocation8]  }
  0x7e   : > { %p1692_p12 = scmp.ne.s32.totalorder %s2057_s17, %s1691_s27  ;;  %s1696_s6 = sshll.u32 %s1835_s14, 4  ;;  %s1697_s6 = int_to_ptr.vmem [resolvable:$false] %s1696_s6 }
  0x7f   : > { %s1698_s24 = scalar_lea.vmem %s1697_s6, 4096  ;;  %p1699_p1 = scmp.lt.s32.totalorder %s2057_s17, %s1697_s6 }
  0x80   : > { %p1694_p11 = pnand %p1692_p12, %p1648_p3  ;;  %p1700_p4 = scmp.lt.s32.totalorder %s1698_s24, %s1691_s27 }
  0x82   : > { %p1695_p7 = pneg %p1694_p11  ;;  %p1701_p6 = por %p1700_p4, %p1699_p1 }
  0x84   : > { %p1702_p10 = pnand %p1701_p6, %p1695_p7 }
  0x86   : > { %1705 = shalt.err (!%p1702_p10)
}
  0x87   : > { %s1836_s1 = smov 64   ;;  %s1837_s7 = smov 4  }
  0x88   : > { %1406 = dma.hbm_to_vmem [thread:$0]  (!%p2016_p13), %s2053_s10, 2048, %s2057_s17, %s257_s0, %s1836_s1, %s1836_s1, %s1837_s7  }
  0x89   : > { %p2233_p3 = scmp.ne.s32.totalorder %s2225_s30, 0 }
  0x8a   : > { %s2088_s11 = sand.u32 (!%p2233_p3), 1, %s1812_s19   ;;  %p2234_p2 = scmp.ne.s32.totalorder (!%p2233_p3), %s2223_s28, 0 }
  0x8b   : > { %279 = sbr.rel (%p2233_p3) target bundleno = 673 (0x2a1), region = 36  ;;  %s1251_s12 = sshll.u32 (!%p2233_p3), %s2088_s11, 4 }
  0x8c   : > { %s282_s16 = scalar_lea.sflag (!%p2233_p3), [#allocation3], %s2088_s11  ;;  %s2094_s27 = scalar_lea.vmem (!%p2233_p3), [#allocation2], %s1251_s12 }
  0x92   : > { %1787 = dma.done.wait (%p2234_p2), %s282_s16, 256  }
  0x93   : > { %1789 = vsyncadd (%p2234_p2), %s282_s16, 4294967040  ;;  %p2235_p13 = scmp.ne.s32.totalorder %s2221_s26, 0 }
  0x95   : > { %1791 = dma.done.wait (%p2235_p13), [#allocation6], 8320  }
  0x96   : > { %1793 = vsyncadd (%p2235_p13), [#allocation6], 4294958976  ;;  %s1254_s0 = sshll.u32 %s2088_s11, 7  ;;  %s299_s30 = scalar_lea.sflag [#allocation9], %s2088_s11 }
  0x97   : > { %s2106_s13 = scalar_lea.vmem [#allocation8], %s1254_s0 }
  0x98   : > { %1795 = dma.done.wait (%p2234_p2), %s299_s30, 2048  }
  0x99   : > { %1797 = vsyncadd (%p2234_p2), %s299_s30, 4294965248  ;;  %v1474_v0 = vld [vmem:[#allocation5 + $0x4] ss:$8 sps:$4 sm:$0xff]   ;;  %v1478_v2 = vld [vmem:[#allocation5] ss:$8 sps:$4 sm:$0xff]   ;;  %s331_s26 = scalar_lea.vmem [#allocation10], %s1251_s12 }
  0x9a   : > { %v1476_v1 = vld [vmem:[#allocation5 + $0x104] ss:$8 sps:$4 sm:$0xff]   ;;  %758 = vmatprep.subr.bf16.mxu1 %v1474_v0  ;;  %v1479_v3 = vld [vmem:[#allocation5 + $0x100] ss:$8 sps:$4 sm:$0xff]   ;;  %v1480_v4 = vld [vmem:[#allocation5 + $0x14] ss:$8 sps:$4 sm:$0xff]  }
  0x9b   : > { %799 = vmatprep.subr.bf16.mxu0 %v1476_v1  ;;  %759 = vmatpush1.bf16.msra.mxu1 %v1478_v2  ;;  %v1482_v5 = vld [vmem:[#allocation5 + $0x114] ss:$8 sps:$4 sm:$0xff]   ;;  %v1484_v6 = vld [vmem:[#allocation5 + $0x10] ss:$8 sps:$4 sm:$0xff]   ;;  %v1486_v8 = vld [vmem:[#allocation5 + $0x24] ss:$8 sps:$4 sm:$0xff]  }
  0x9c   : > { %800 = vmatpush1.bf16.msra.mxu0 %v1479_v3  ;;  %760 = vmatprep.subr.bf16.mxu1 %v1480_v4  ;;  %v1485_v7 = vld [vmem:[#allocation5 + $0x110] ss:$8 sps:$4 sm:$0xff]   ;;  %v1488_v9 = vld [vmem:[#allocation5 + $0x124] ss:$8 sps:$4 sm:$0xff]   ;;  %v1490_v10 = vld [vmem:[#allocation5 + $0x20] ss:$8 sps:$4 sm:$0xff]  }
  0x9d   : > { %801 = vmatprep.subr.bf16.mxu0 %v1482_v5  ;;  %v1491_v11 = vld [vmem:[#allocation5 + $0x120] ss:$8 sps:$4 sm:$0xff]   ;;  %v1492_v12 = vld [vmem:[#allocation5 + $0x34] ss:$8 sps:$4 sm:$0xff]   ;;  %v1496_v14 = vld [vmem:[#allocation5 + $0x30] ss:$8 sps:$4 sm:$0xff]  }
  0x9e   : > { %v1494_v13 = vld [vmem:[#allocation5 + $0x134] ss:$8 sps:$4 sm:$0xff]   ;;  %v1497_v15 = vld [vmem:[#allocation5 + $0x130] ss:$8 sps:$4 sm:$0xff]   ;;  %v1498_v16 = vld [vmem:[#allocation5 + $0x44] ss:$8 sps:$4 sm:$0xff]  }
  0x9f   : > { %761 = vmatpush1.bf16.msra.mxu1 %v1484_v6  ;;  %v1500_v17 = vld [vmem:[#allocation5 + $0x144] ss:$8 sps:$4 sm:$0xff]   ;;  %v1502_v18 = vld [vmem:[#allocation5 + $0x40] ss:$8 sps:$4 sm:$0xff]   ;;  %v1504_v20 = vld [vmem:[#allocation5 + $0x54] ss:$8 sps:$4 sm:$0xff]  }
  0xa0   : > { %802 = vmatpush1.bf16.msra.mxu0 %v1485_v7  ;;  %762 = vmatprep.subr.bf16.mxu1 %v1486_v8  ;;  %v1503_v19 = vld [vmem:[#allocation5 + $0x140] ss:$8 sps:$4 sm:$0xff]   ;;  %v1506_v21 = vld [vmem:[#allocation5 + $0x154] ss:$8 sps:$4 sm:$0xff]   ;;  %v1508_v22 = vld [vmem:[#allocation5 + $0x50] ss:$8 sps:$4 sm:$0xff]  }
  0xa1   : > { %803 = vmatprep.subr.bf16.mxu0 %v1488_v9  ;;  %v1509_v23 = vld [vmem:[#allocation5 + $0x150] ss:$8 sps:$4 sm:$0xff]   ;;  %v1510_v24 = vld [vmem:[#allocation5 + $0x64] ss:$8 sps:$4 sm:$0xff]   ;;  %v1514_v26 = vld [vmem:[#allocation5 + $0x60] ss:$8 sps:$4 sm:$0xff]  }
  0xa2   : > { %v1512_v25 = vld [vmem:[#allocation5 + $0x164] ss:$8 sps:$4 sm:$0xff]   ;;  %v1515_v27 = vld [vmem:[#allocation5 + $0x160] ss:$8 sps:$4 sm:$0xff]   ;;  %v1516_v28 = vld [vmem:[#allocation5 + $0x74] ss:$8 sps:$4 sm:$0xff]  }
  0xa3   : > { %763 = vmatpush1.bf16.msra.mxu1 %v1490_v10  ;;  %v1518_v29 = vld [vmem:[#allocation5 + $0x174] ss:$8 sps:$4 sm:$0xff]   ;;  %v1520_v30 = vld [vmem:[#allocation5 + $0x70] ss:$8 sps:$4 sm:$0xff]   ;;  %v1522_v32 = vld [vmem:[#allocation5 + $0x84] ss:$8 sps:$4 sm:$0xff]  }
  0xa4   : > { %804 = vmatpush1.bf16.msra.mxu0 %v1491_v11  ;;  %764 = vmatprep.subr.bf16.mxu1 %v1492_v12  ;;  %v1521_v31 = vld [vmem:[#allocation5 + $0x170] ss:$8 sps:$4 sm:$0xff]   ;;  %v1524_v33 = vld [vmem:[#allocation5 + $0x184] ss:$8 sps:$4 sm:$0xff]   ;;  %v1526_v34 = vld [vmem:[#allocation5 + $0x80] ss:$8 sps:$4 sm:$0xff]  }
  0xa5   : > { %805 = vmatprep.subr.bf16.mxu0 %v1494_v13  ;;  %v1527_v35 = vld [vmem:[#allocation5 + $0x180] ss:$8 sps:$4 sm:$0xff]   ;;  %v1528_v36 = vld [vmem:[#allocation5 + $0x94] ss:$8 sps:$4 sm:$0xff]   ;;  %v1532_v38 = vld [vmem:[#allocation5 + $0x90] ss:$8 sps:$4 sm:$0xff]  }
  0xa6   : > { %v1530_v37 = vld [vmem:[#allocation5 + $0x194] ss:$8 sps:$4 sm:$0xff]   ;;  %v1533_v39 = vld [vmem:[#allocation5 + $0x190] ss:$8 sps:$4 sm:$0xff]   ;;  %v1534_v40 = vld [vmem:[#allocation5 + $0xa4] ss:$8 sps:$4 sm:$0xff]  }
  0xa7   : > { %765 = vmatpush1.bf16.msra.mxu1 %v1496_v14  ;;  %v1536_v41 = vld [vmem:[#allocation5 + $0x1a4] ss:$8 sps:$4 sm:$0xff]   ;;  %v1538_v42 = vld [vmem:[#allocation5 + $0xa0] ss:$8 sps:$4 sm:$0xff]   ;;  %v1540_v44 = vld [vmem:[#allocation5 + $0xb4] ss:$8 sps:$4 sm:$0xff]  }
  0xa8   : > { %806 = vmatpush1.bf16.msra.mxu0 %v1497_v15  ;;  %766 = vmatprep.subr.bf16.mxu1 %v1498_v16  ;;  %v1539_v43 = vld [vmem:[#allocation5 + $0x1a0] ss:$8 sps:$4 sm:$0xff]   ;;  %v1542_v45 = vld [vmem:[#allocation5 + $0x1b4] ss:$8 sps:$4 sm:$0xff]   ;;  %v1544_v46 = vld [vmem:[#allocation5 + $0xb0] ss:$8 sps:$4 sm:$0xff]  }
  0xa9   : > { %807 = vmatprep.subr.bf16.mxu0 %v1500_v17  ;;  %v1545_v47 = vld [vmem:[#allocation5 + $0x1b0] ss:$8 sps:$4 sm:$0xff]   ;;  %v1546_v51 = vld [vmem:[#allocation5 + $0xc4] ss:$8 sps:$4 sm:$0xff]   ;;  %v1550_v54 = vld [vmem:[#allocation5 + $0xc0] ss:$8 sps:$4 sm:$0xff]  }
  0xaa   : > { %v342_v48 = vld [vmem:[%s2094_s27] sm:$0xff]  ;;  %v343_v50 = vld [vmem:[%s2094_s27 + $0x8] sm:$0xff]  ;;  %s1350_s28 = sshll.u32 %s1820_s21, 8  ;;  %s1063_s25 = sshll.u32 %s331_s26, 4  ;;  %s1064_s25 = int_to_ptr.vmem [resolvable:$true] %s1063_s25 }
  0xab   : > { %767 = vmatpush1.bf16.msra.mxu1 %v1502_v18  ;;  %v1258_v49 = vcombine.high %v342_v48, %v342_v48  ;;  %v1260_v52 = vcombine.high %v343_v50, %v343_v50  ;;  %v1548_v53 = vld [vmem:[#allocation5 + $0x1c4] ss:$8 sps:$4 sm:$0xff]   ;;  %v1551_v55 = vld [vmem:[#allocation5 + $0x1c0] ss:$8 sps:$4 sm:$0xff]   ;;  %v1552_v56 = vld [vmem:[#allocation5 + $0xd4] ss:$8 sps:$4 sm:$0xff]   ;;  %v1257_v5 = vcombine.low %v342_v48, %v342_v48  ;;  %v1259_v6 = vcombine.low %v343_v50, %v343_v50  ;;  %s2136_s14 = scalar_lea.hbm %s2213_s4, %s1350_s28 }
  0xac   : > { %808 = vmatpush1.bf16.msra.mxu0 %v1503_v19  ;;  %768 = vmatprep.subr.bf16.mxu1 %v1504_v20  ;;  %v1554_v57 = vld [vmem:[#allocation5 + $0x1d4] ss:$8 sps:$4 sm:$0xff]   ;;  %v1556_v58 = vld [vmem:[#allocation5 + $0xd0] ss:$8 sps:$4 sm:$0xff]   ;;  %v1558_v60 = vld [vmem:[#allocation5 + $0xe4] ss:$8 sps:$4 sm:$0xff]  }
  0xad   : > { %809 = vmatprep.subr.bf16.mxu0 %v1506_v21  ;;  %790 = vmatprep.mubr.bf16.mxu1 %v1258_v49  ;;  %v1557_v59 = vld [vmem:[#allocation5 + $0x1d0] ss:$8 sps:$4 sm:$0xff]   ;;  %v1560_v61 = vld [vmem:[#allocation5 + $0x1e4] ss:$8 sps:$4 sm:$0xff]   ;;  %v1562_v62 = vld [vmem:[#allocation5 + $0xe0] ss:$8 sps:$4 sm:$0xff]  }
  0xae   : > { %831 = vmatprep.mubr.bf16.mxu0 %v1260_v52  ;;  %v1563_v63 = vld [vmem:[#allocation5 + $0x1e0] ss:$8 sps:$4 sm:$0xff]   ;;  %v1564_v0 = vld [vmem:[#allocation5 + $0xf4] ss:$8 sps:$4 sm:$0xff]   ;;  %v1568_v2 = vld [vmem:[#allocation5 + $0xf0] ss:$8 sps:$4 sm:$0xff]  }
  0xaf   : > { %769 = vmatpush1.bf16.msra.mxu1 %v1508_v22  ;;  %v1566_v1 = vld [vmem:[#allocation5 + $0x1f4] ss:$8 sps:$4 sm:$0xff]   ;;  %v1569_v3 = vld [vmem:[#allocation5 + $0x1f0] ss:$8 sps:$4 sm:$0xff]   ;;  %v1574_v4 = vld [vmem:[%s2106_s13 + $0x40] sm:$0xff]   ;;  %v414_v22 = vlaneseq  ;;  %s1042_s6 = scalar_lea.sflag [#allocation4], %s2088_s11 }
  0xb0   : > { %810 = vmatpush1.bf16.msra.mxu0 %v1509_v23  ;;  %770 = vmatprep.subr.bf16.mxu1 %v1510_v24  ;;  %v1575_v7 = vld [vmem:[%s2106_s13] sm:$0xff]   ;;  %v1576_v8 = vld [vmem:[%s2106_s13 + $0x48] sm:$0xff]   ;;  %v1578_v10 = vld [vmem:[%s2106_s13 + $0x50] sm:$0xff]   ;;  %s1706_s24 = scalar_lea.vmem %s1064_s25, 256  ;;  %s1838_s1 = smov [#allocation10]  }
  0xb1   : > { %811 = vmatprep.subr.bf16.mxu0 %v1512_v25  ;;  %v1577_v9 = vld [vmem:[%s2106_s13 + $0x8] sm:$0xff]   ;;  %v1579_v11 = vld [vmem:[%s2106_s13 + $0x10] sm:$0xff]   ;;  %v1580_v12 = vld [vmem:[%s2106_s13 + $0x58] sm:$0xff]   ;;  %v415_v23 = vshrl.u32 %v414_v22, 7  ;;  %p1707_p0 = scmp.ne.s32.totalorder %s1064_s25, %s1706_s24  ;;  %s1710_s7 = sshll.u32 %s1838_s1, 4  ;;  %s1711_s7 = int_to_ptr.vmem [resolvable:$false] %s1710_s7 }
  0xb2   : > { %v1581_v13 = vld [vmem:[%s2106_s13 + $0x18] sm:$0xff]   ;;  %v1582_v14 = vld [vmem:[%s2106_s13 + $0x60] sm:$0xff]   ;;  %v1584_v16 = vld [vmem:[%s2106_s13 + $0x68] sm:$0xff]   ;;  %s1712_s12 = scalar_lea.vmem %s1711_s7, 512  ;;  %p1713_p12 = scmp.lt.s32.totalorder %s1064_s25, %s1711_s7 }
  0xb3   : > { %771 = vmatpush1.bf16.msra.mxu1 %v1514_v26  ;;  %v1583_v15 = vld [vmem:[%s2106_s13 + $0x20] sm:$0xff]   ;;  %v1585_v17 = vld [vmem:[%s2106_s13 + $0x28] sm:$0xff]   ;;  %v1586_v18 = vld [vmem:[%s2106_s13 + $0x70] sm:$0xff]   ;;  %v416_v24 = vsub.s32 0, %v415_v23  ;;  %v420_v26 = vsub.s32 1, %v415_v23  ;;  %p1708_p5 = pnand %p1707_p0, %p1995_p8  ;;  %p1714_p11 = scmp.lt.s32.totalorder %s1712_s12, %s1706_s24 }
  0xb4   : > { %812 = vmatpush1.bf16.msra.mxu0 %v1515_v27  ;;  %772 = vmatprep.subr.bf16.mxu1 %v1516_v28  ;;  %v1587_v19 = vld [vmem:[%s2106_s13 + $0x30] sm:$0xff]   ;;  %v1588_v20 = vld [vmem:[%s2106_s13 + $0x78] sm:$0xff]  }
  0xb5   : > { %813 = vmatprep.subr.bf16.mxu0 %v1518_v29  ;;  %v1589_v21 = vld [vmem:[%s2106_s13 + $0x38] sm:$0xff]   ;;  %p1709_p9 = pneg %p1708_p5  ;;  %p1715_p7 = por %p1714_p11, %p1713_p12 }
  0xb6   : > { %v408_v25 = vld [vmem:[#allocation7] ss:$4 sm:$0x3] }
  0xb7   : > { %773 = vmatpush1.bf16.msra.mxu1 %v1520_v30  ;;  %v417_v27 = vrot.slane %v408_v25, %v416_v24  ;;  %v421_v28 = vrot.slane %v408_v25, %v420_v26  ;;  %v410_v30 = vld [vmem:[#allocation7 + $0x1] ss:$4 sm:$0x3]  ;;  %p1716_p1 = pnand %p1715_p7, %p1709_p9 }
  0xb8   : > { %814 = vmatpush1.bf16.msra.mxu0 %v1521_v31  ;;  %774 = vmatprep.subr.bf16.mxu1 %v1522_v32 }
  0xb9   : > { %815 = vmatprep.subr.bf16.mxu0 %v1524_v33 }
  0xbb   : > { %775 = vmatpush1.bf16.msra.mxu1 %v1526_v34 }
  0xbc   : > { %816 = vmatpush1.bf16.msra.mxu0 %v1527_v35  ;;  %776 = vmatprep.subr.bf16.mxu1 %v1528_v36  ;;  %v412_v35 = vld [vmem:[#allocation7 + $0x2] ss:$4 sm:$0x3] }
  0xbd   : > { %817 = vmatprep.subr.bf16.mxu0 %v1530_v37  ;;  %v863_v48 = vrot.slane %v412_v35, %v420_v26 }
  0xbf   : > { %777 = vmatpush1.bf16.msra.mxu1 %v1532_v38 }
  0xc0   : > { %818 = vmatpush1.bf16.msra.mxu0 %v1533_v39  ;;  %778 = vmatprep.subr.bf16.mxu1 %v1534_v40  ;;  %v846_v40 = vrot.slane %v410_v30, %v416_v24 }
  0xc1   : > { %819 = vmatprep.subr.bf16.mxu0 %v1536_v41 }
  0xc3   : > { %779 = vmatpush1.bf16.msra.mxu1 %v1538_v42 }
  0xc4   : > { %820 = vmatpush1.bf16.msra.mxu0 %v1539_v43  ;;  %780 = vmatprep.subr.bf16.mxu1 %v1540_v44  ;;  %v850_v44 = vrot.slane %v410_v30, %v420_v26 }
  0xc5   : > { %821 = vmatprep.subr.bf16.mxu0 %v1542_v45 }
  0xc7   : > { %781 = vmatpush1.bf16.msra.mxu1 %v1544_v46  ;;  %v859_v46 = vrot.slane %v412_v35, %v416_v24 }
  0xc8   : > { %822 = vmatpush1.bf16.msra.mxu0 %v1545_v47  ;;  %782 = vmatprep.subr.bf16.mxu1 %v1546_v51 }
  0xc9   : > { %823 = vmatprep.subr.bf16.mxu0 %v1548_v53 }
  0xcb   : > { %783 = vmatpush1.bf16.msra.mxu1 %v1550_v54 }
  0xcc   : > { %824 = vmatpush1.bf16.msra.mxu0 %v1551_v55  ;;  %784 = vmatprep.subr.bf16.mxu1 %v1552_v56 }
  0xcd   : > { %825 = vmatprep.subr.bf16.mxu0 %v1554_v57 }
  0xcf   : > { %785 = vmatpush1.bf16.msra.mxu1 %v1556_v58 }
  0xd0   : > { %826 = vmatpush1.bf16.msra.mxu0 %v1557_v59  ;;  %786 = vmatprep.subr.bf16.mxu1 %v1558_v60 }
  0xd1   : > { %827 = vmatprep.subr.bf16.mxu0 %v1560_v61 }
  0xd3   : > { %787 = vmatpush1.bf16.msra.mxu1 %v1562_v62 }
  0xd4   : > { %828 = vmatpush1.bf16.msra.mxu0 %v1563_v63  ;;  %788 = vmatprep.subr.bf16.mxu1 %v1564_v0 }
  0xd5   : > { %829 = vmatprep.subr.bf16.mxu0 %v1566_v1 }
  0xd7   : > { %789 = vmatpush1.bf16.msra.mxu1 %v1568_v2 }
  0xd8   : > { %830 = vmatpush1.bf16.msra.mxu0 %v1569_v3  ;;  %1351 = vmatprep.subr.bf16.mxu1 %v1574_v4 }
  0xda   : > { %791 = vmatmul.mubr.bf16.vlgmr.msra.gmra.mrb[0].mxu1 %v1257_v5 }
  0xdb   : > { %832 = vmatmul.mubr.bf16.vlgmr.msra.gmra.mrb[0].mxu0 %v1259_v6  ;;  %1352 = vmatpush3.bf16.msra.mxu1 %v1575_v7 }
  0xdc   : > { %1353 = vmatprep.subr.bf16.mxu1 %v1576_v8 }
  0xdf   : > { %1354 = vmatpush3.bf16.msra.mxu1 %v1577_v9 }
  0xe0   : > { %1355 = vmatprep.subr.bf16.mxu1 %v1578_v10 }
  0xe3   : > { %1356 = vmatpush3.bf16.msra.mxu1 %v1579_v11 }
  0xe4   : > { %1357 = vmatprep.subr.bf16.mxu1 %v1580_v12 }
  0xe7   : > { %1358 = vmatpush3.bf16.msra.mxu1 %v1581_v13 }
  0xe8   : > { %1359 = vmatprep.subr.bf16.mxu1 %v1582_v14 }
  0xeb   : > { %1360 = vmatpush3.bf16.msra.mxu1 %v1583_v15 }
  0xec   : > { %1361 = vmatprep.subr.bf16.mxu1 %v1584_v16 }
  0xef   : > { %1362 = vmatpush3.bf16.msra.mxu1 %v1585_v17 }
  0xf0   : > { %1363 = vmatprep.subr.bf16.mxu1 %v1586_v18 }
  0xf3   : > { %1364 = vmatpush3.bf16.msra.mxu1 %v1587_v19 }
  0xf4   : > { %1365 = vmatprep.subr.bf16.mxu1 %v1588_v20 }
  0xf7   : > { %1366 = vmatpush3.bf16.msra.mxu1 %v1589_v21 }
 0x1ad   : > { %v792_v29 = vpop.f32.mrb[0].mxu1 }
 0x1ae   : > { %v833_v31 = vpop.f32.mrb[0].mxu0  ;;  %v793_v32 = vadd.f32 %v792_v29, %v417_v27  ;;  %v794_v33 = vpop.f32.mrb[1].mxu1 }
 0x1af   : > { %v835_v34 = vpop.f32.mrb[1].mxu0  ;;  %v795_v36 = vadd.f32 %v794_v33, %v421_v28  ;;  %v796_v37 = vpop.f32.mrb[2].mxu1 }
 0x1b0   : > { %v837_v38 = vpop.f32.mrb[2].mxu0  ;;  %v834_v39 = vadd.f32 %v833_v31, %v793_v32  ;;  %v797_v41 = vpop.f32.mrb[3].mxu1 }
 0x1b1   : > { %v838_v42 = vpop.f32.mrb[3].mxu0  ;;  %v836_v43 = vadd.f32 %v835_v34, %v795_v36 }
 0x1b2   : > { %v840_v45 = vmax.f32 %v834_v39, 0.0 }
 0x1b3   : > { %v841_v47 = vmax.f32 %v836_v43, 0.0 }
 0x1b4   : > { %v853_v49 = vmul.f32 %v846_v40, %v840_v45 }
 0x1b5   : > { %v854_v50 = vmul.f32 %v850_v44, %v841_v47 }
 0x1b6   : > { %v866_v51 = vadd.f32 %v859_v46, %v853_v49 }
 0x1b7   : > { %v867_v52 = vadd.f32 %v863_v48, %v854_v50 }
 0x1b8   : > { %868 = vst [vmem:[%s331_s26] sm:$0xff] %v866_v51  ;;  %v870_v54 = vpack.c.bf16 %v866_v51, %v866_v51 }
 0x1b9   : > { %v871_v53 = vpack.c.bf16 %v867_v52, %v867_v52  ;;  %869 = vst [vmem:[%s331_s26 + $0x8] sm:$0xff] %v867_v52 }
 0x1bb   : > { %1032 = vmatprep.mubr.bf16.mxu1 %v871_v53 }
 0x1bc   : > { %1033 = vmatmul.mubr.bf16.vlgmr.msra.gmra.mrb[4].mxu1 %v870_v54 }
 0x1bd   : > { %1719 = shalt.err (!%p1716_p1)
}
 0x1be   : > { %s1720_s16 = scalar_lea.hbm %s2136_s14, 256  ;;  %s1724_s30 = scalar_lea.hbm %s2213_s4, 1536 }
 0x1bf   : > { %p1721_p4 = scmp.ne.s32.totalorder %s2136_s14, %s1720_s16  ;;  %p1725_p3 = scmp.lt.u32.totalorder %s2136_s14, %s2213_s4 }
 0x1c0   : > { %p1726_p2 = scmp.lt.u32.totalorder %s1724_s30, %s1720_s16  ;;  %p1728_p0 = scmp.lt.u32.totalorder %s1720_s16, %s2136_s14 }
 0x1c1   : > { %p1722_p6 = pnand %p1721_p4, %p1995_p8 }
 0x1c2   : > { %p1727_p13 = por %p1726_p2, %p1725_p3 }
 0x1c3   : > { %p1723_p10 = pneg %p1722_p6 }
 0x1c4   : > { %p1729_p5 = por %p1728_p0, %p1727_p13 }
 0x1c6   : > { %p1730_p9 = pnand %p1729_p5, %p1723_p10 }
 0x1c8   : > { %1733 = shalt.err (!%p1730_p9)
}
 0x1c9   : > { %1389 = dma.vmem_to_hbm [thread:$0]  (%p1995_p8), %s1064_s25, 256, %s2136_s14, %s1042_s6  }
 0x1ca   : > { %s1256_s28 = sshll.u32 %s2088_s11, 3  ;;  %s1345_s10 = sshll.u32 %s1820_s21, 7 }
 0x1cb   : > { %s338_s17 = scalar_lea.vmem [#allocation11], %s1256_s28  ;;  %s2161_s12 = scalar_lea.hbm %s2214_s5, %s1345_s10 }
 0x1cc   : > { %s1078_s24 = sshll.u32 %s338_s17, 4  ;;  %s1047_s25 = scalar_lea.sflag [#allocation12], %s2088_s11  ;;  %s2163_s24 = int_to_ptr.vmem [resolvable:$true] %s1078_s24 }
 0x1cd   : > { %s1734_s21 = scalar_lea.vmem %s2163_s24, 128  ;;  %s1839_s14 = smov [#allocation11]  }
 0x1ce   : > { %p1735_p12 = scmp.ne.s32.totalorder %s2163_s24, %s1734_s21  ;;  %s1738_s6 = sshll.u32 %s1839_s14, 4  ;;  %s1739_s6 = int_to_ptr.vmem [resolvable:$false] %s1738_s6 }
 0x1cf   : > { %s1740_s16 = scalar_lea.vmem %s1739_s6, 256  ;;  %p1741_p1 = scmp.lt.s32.totalorder %s2163_s24, %s1739_s6 }
 0x1d0   : > { %p1736_p11 = pnand %p1735_p12, %p1995_p8  ;;  %p1742_p4 = scmp.lt.s32.totalorder %s1740_s16, %s1734_s21 }
 0x1d2   : > { %p1737_p7 = pneg %p1736_p11  ;;  %p1743_p6 = por %p1742_p4, %p1741_p1 }
 0x1d4   : > { %p1744_p10 = pnand %p1743_p6, %p1737_p7 }
 0x28f   : > { %v1367_v55 = vpop.f32.mrb[4].mxu1 }
 0x290   : > { %v1368_v56 = vpop.f32.mrb[5].mxu1 }
 0x291   : > { %v1369_v57 = vadd.f32 %v1368_v56, %v1367_v55  ;;  %v1370_v58 = vpop.f32.mrb[6].mxu1 }
 0x292   : > { %v1371_v59 = vpop.f32.mrb[7].mxu1 }
 0x293   : > { %1040 = vst [vmem:[%s338_s17] sm:$0xff] %v1369_v57 }
 0x294   : > { %1747 = shalt.err (!%p1744_p10)
}
 0x295   : > { %s1748_s11 = scalar_lea.hbm %s2161_s12, 128  ;;  %s1752_s30 = scalar_lea.hbm %s2214_s5, 768 }
 0x296   : > { %p1749_p3 = scmp.ne.s32.totalorder %s2161_s12, %s1748_s11  ;;  %p1753_p0 = scmp.lt.u32.totalorder %s2161_s12, %s2214_s5 }
 0x297   : > { %p1754_p5 = scmp.lt.u32.totalorder %s1752_s30, %s1748_s11  ;;  %p1756_p12 = scmp.lt.u32.totalorder %s1748_s11, %s2161_s12 }
 0x298   : > { %p1750_p2 = pnand %p1749_p3, %p1995_p8 }
 0x299   : > { %p1755_p9 = por %p1754_p5, %p1753_p0 }
 0x29a   : > { %p1751_p13 = pneg %p1750_p2 }
 0x29b   : > { %p1757_p11 = por %p1756_p12, %p1755_p9 }
 0x29d   : > { %p1758_p7 = pnand %p1757_p11, %p1751_p13 }
 0x29f   : > { %1761 = shalt.err (!%p1758_p7)
}
 0x2a0   : > { %1390 = dma.vmem_to_hbm [thread:$0]  (%p1995_p8), %s2163_s24, 128, %s2161_s12, %s1047_s25  }
 0x2a1 PF: > { %p1419_p1 = scmp.ge.s32.totalorder %s1828_s23, 2  ;;  %s1090_s28 = sand.u32 1, %s1808_s18  }
 0x2a2   : > { %p2236_p4 = scmp.ne.s32.totalorder %s2224_s29, 0  ;;  %s1091_s10 = scalar_lea.sflag [#allocation4], %s1090_s28 }
 0x2a4   : > { %p1408_p6 = pnand %p1419_p1, %p2236_p4 }
 0x2a6   : > { %1799 = dma.done.wait (!%p1408_p6), %s1091_s10, 256  }
 0x2a7   : > { %1801 = vsyncadd (!%p1408_p6), %s1091_s10, 4294967040  ;;  %s1100_s17 = scalar_lea.sflag [#allocation12], %s1090_s28 }
 0x2a8   : > { %1803 = dma.done.wait (!%p1408_p6), %s1100_s17, 128  }
 0x2a9   : > { %1805 = vsyncadd (!%p1408_p6), %s1100_s17, 4294967168  ;;  %s29_s23 = sadd.s32 1, %s1828_s23   ;;  %s2237_s18 = smov %s1812_s19 }
 0x2aa   : > { %p26_p10 = scmp.ge.s32.totalorder %s29_s23, 8   ;;  %s2238_s19 = smov %s1816_s20 }
 0x2ab   : > { %s2239_s20 = smov %s2007_s15  ;;  %s2240_s21 = smov %s1824_s22 }
 0x2ac   : > { %s2241_s22 = smov %s2243_s9  ;;  %28 = sbr.rel (!%p26_p10) target bundleno = 14 (0xe), region = 121 }
 0x2b3   :  { %1105 = vsyncpa [#allocation3], 1 }
 0x2b4   :  { %1107 = vsyncpa [#allocation3 + $0x1], 1 }
 0x2b5   :  { %1108 = vsyncpa [#allocation6], 1 }
 0x2b6   :  { %1109 = vsyncpa [#allocation9], 1 }
 0x2b7   :  { %1111 = vsyncpa [#allocation9 + $0x1], 1 }
 0x2b8   :  { %1112 = vsyncpa [#allocation4], 1 }
 0x2b9   :  { %1114 = vsyncpa [#allocation4 + $0x1], 1 }
 0x2ba   :  { %1115 = vsyncpa [#allocation12], 1 }
 0x2bb   :  { %1117 = vsyncpa [#allocation12 + $0x1], 1 }

</bundles_post_ra>
